<compile_context>
chip_gen: v7x
topology: tpu7x:2x2x1
jax: 0.10.0
libtpu: 0.0.40
codegen_flags: <defaults>
</compile_context>

<pallas_src>
import functools

import jax
import jax.numpy as jnp
from jax import lax
from jax.experimental import pallas as pl
from jax.experimental.pallas import tpu as pltpu

_INV_SQRT2 = 0.7071067811865476
_SQRT_2_OVER_PI = 0.7978845608028654


def _gelu(y, approximate):
    if approximate:
        # tanh approximation: transcendental runs on the (otherwise idle) EUP slot.
        return 0.5 * y * (1.0 + jnp.tanh(_SQRT_2_OVER_PI * (y + 0.044715 * y * y * y)))
    # exact erf-based GELU, matching torch.nn.GELU() default
    return 0.5 * y * (1.0 + lax.erf(y * _INV_SQRT2))


def _vmem_capacity_bytes():
    try:
        return int(pltpu.get_tpu_info().vmem_capacity_bytes)
    except Exception:
        return 64 << 20  # conservative: v7x per-core VMEM


def _pick_tiles(N, C, K, HW, out_itemsize, budget_bytes, t_hw_override=None):
    """Pick (nb, t_hw): batch block and spatial tile sized to the VMEM budget."""
    # bytes per spatial column for a double-buffered (input + output) block pair
    per_col = 2 * (4 * C + out_itemsize * K)
    if t_hw_override is not None:
        t_hw = int(min(t_hw_override, HW))
        if t_hw < HW:
            assert t_hw % 128 == 0, "spatial tile must be a multiple of 128 (lane width)"
    else:
        t = budget_bytes // per_col
        if t >= HW:
            t_hw = HW                      # whole image in one block
        else:
            t_hw = max(128, (t // 128) * 128)
    nb = 1
    if t_hw == HW:
        # whole image fits in one tile -> block the batch dim to fatten each DMA
        per_img = per_col * HW
        nb = int(min(N, 8, max(1, budget_bytes // max(per_img, 1))))
    return nb, t_hw


# ---------------------------------------------------------------------------
# Kernel 1: fused 1x1-conv (matmul over C) + bias + GELU, NCHW layout
# ---------------------------------------------------------------------------
def _conv1x1_gelu_kernel(x_ref, w_ref, b_ref, o_ref, *, approximate):
    # x_ref: (nb, C, t)   w_ref: (K, C)   b_ref: (K, 1)   o_ref: (nb, K, t)
    nb = x_ref.shape[0]
    for b in range(nb):  # static unroll; nb is small
        y = jnp.dot(w_ref[...], x_ref[b], preferred_element_type=jnp.float32)
        o_ref[b] = _gelu(y + b_ref[...], approximate).astype(o_ref.dtype)


# ---------------------------------------------------------------------------
# Kernel 2: fused 1x1-conv + GELU + global max pool (AdaptiveMaxPool2d((1,1)))
# ---------------------------------------------------------------------------
def _conv1x1_gelu_maxpool_kernel(x_ref, w_ref, b_ref, o_ref, *,
                                 t_hw, hw, num_s, part_tiles, n_parts, approximate):
    # x_ref: (1, C, t)  w_ref: (K, C)  b_ref: (K, 1)
    # o_ref: (1, K, 1) resident accumulator across the 'arbitrary' spatial axis
    i = pl.program_id(0)   # flattened (batch, spatial-part) index
    j = pl.program_id(1)   # spatial tile within this part

    @pl.when(j == 0)
    def _():
        o_ref[...] = jnp.full(o_ref.shape, -jnp.inf, o_ref.dtype)

    y = jnp.dot(w_ref[...], x_ref[0], preferred_element_type=jnp.float32)  # (K, t)
    g = _gelu(y + b_ref[...], approximate)

    if hw % t_hw != 0:
        # Only the globally-last spatial tile contains out-of-bounds (garbage, possibly
        # NaN) columns; gate the iota/compare/select so all other steps skip it.
        global_s = (i % n_parts) * part_tiles + j
        is_last = global_s == num_s - 1

        @pl.when(jnp.logical_not(is_last))
        def _():
            o_ref[0] = jnp.maximum(o_ref[0], jnp.max(g, axis=1, keepdims=True))

        @pl.when(is_last)
        def _():
            col = lax.broadcasted_iota(jnp.int32, g.shape, 1) + global_s * t_hw
            gm = jnp.where(col < hw, g, -jnp.inf)   # NaN-safe: selects by mask
            o_ref[0] = jnp.maximum(o_ref[0], jnp.max(gm, axis=1, keepdims=True))
    else:
        o_ref[0] = jnp.maximum(o_ref[0], jnp.max(g, axis=1, keepdims=True))


# ---------------------------------------------------------------------------
# Wrapper reproducing VisionLanguageHead.forward
# ---------------------------------------------------------------------------
def vision_language_head(x_nchw, w_ck, b_k, return_feats=True, *,
                         approximate_gelu=False, feats_dtype=jnp.float32, t_hw=None):
    """x_nchw: (N, C, H, W) f32, w_ck: (C, K) f32, b_k: (K,) f32.

    Returns (N, K, H, W) if return_feats else (N, K, 1, 1).
    """
    N, C, H, W = x_nchw.shape
    K = w_ck.shape[1]
    HW = H * W

    cap = _vmem_capacity_bytes()
    budget = int(0.40 * cap)                                  # bytes for pipelined blocks
    out_itemsize = jnp.dtype(feats_dtype).itemsize if return_feats else 4
    nb, t = _pick_tiles(N, C, K, HW, out_itemsize, budget, t_hw_override=t_hw)

    x_ncs = x_nchw.reshape(N, C, HW)   # contiguous view of NCHW: free reshape, no pad
    w_kc = jnp.transpose(w_ck)         # tiny (K, C)
    b2 = b_k.reshape(K, 1)

    num_s = pl.cdiv(HW, t)
    nb_eff = nb if return_feats else 1
    blk_bytes = (2 * nb_eff * t * (4 * C + out_itemsize * K)   # double-buffered in+out
                 + 2 * (4 * K * C) + 2 * (4 * K))              # resident weight + bias
    vmem_limit = int(min(0.85 * cap, max(blk_bytes + (4 << 20), 32 << 20)))

    if return_feats:
        grid = (pl.cdiv(N, nb), num_s)
        kernel = functools.partial(_conv1x1_gelu_kernel, approximate=approximate_gelu)
        feats = pl.pallas_call(
            kernel,
            out_shape=jax.ShapeDtypeStruct((N, K, HW), feats_dtype),
            grid_spec=pltpu.PrefetchScalarGridSpec(
                num_scalar_prefetch=0,
                grid=grid,
                in_specs=[
                    pl.BlockSpec((nb, C, t), lambda bi, s: (bi, 0, s)),
                    pl.BlockSpec((K, C), lambda bi, s: (0, 0)),
                    pl.BlockSpec((K, 1), lambda bi, s: (0, 0)),
                ],
                out_specs=pl.BlockSpec((nb, K, t), lambda bi, s: (bi, 0, s)),
            ),
            compiler_params=pltpu.CompilerParams(
                dimension_semantics=("parallel", "parallel"),
                vmem_limit_bytes=vmem_limit),
        )(x_ncs, w_kc, b2)
        return feats.reshape(N, K, H, W)

    # Pooled path: split the spatial reduction into 2 parallel parts when there is a
    # single image, so both v7x TensorCores do work; combine with one jnp.max outside.
    n_parts = 2 if (N == 1 and num_s >= 2 and num_s % 2 == 0) else 1
    part_tiles = num_s // n_parts
    grid = (N * n_parts, part_tiles)
    kernel = functools.partial(
        _conv1x1_gelu_maxpool_kernel, t_hw=t, hw=HW, num_s=num_s,
        part_tiles=part_tiles, n_parts=n_parts, approximate=approximate_gelu)
    pooled = pl.pallas_call(
        kernel,
        out_shape=jax.ShapeDtypeStruct((N * n_parts, K, 1), jnp.float32),
        grid_spec=pltpu.PrefetchScalarGridSpec(
            num_scalar_prefetch=0,
            grid=grid,
            in_specs=[
                pl.BlockSpec(
                    (1, C, t),
                    lambda i, j: (i // n_parts, 0, (i % n_parts) * part_tiles + j)),
                pl.BlockSpec((K, C), lambda i, j: (0, 0)),
                pl.BlockSpec((K, 1), lambda i, j: (0, 0)),
            ],
            out_specs=pl.BlockSpec((1, K, 1), lambda i, j: (i, 0, 0)),
        ),
        compiler_params=pltpu.CompilerParams(
            dimension_semantics=("parallel", "arbitrary"),
            vmem_limit_bytes=vmem_limit),
    )(x_ncs, w_kc, b2)
    pooled = jnp.max(pooled.reshape(N, n_parts, K, 1), axis=1)
    return pooled.reshape(N, K, 1, 1)


# ---------------------------------------------------------------------------
# Reference (plain JAX) for sanity check
# ---------------------------------------------------------------------------
def _reference(x_nchw, w_ck, b_k, return_feats=True):
    y = jnp.einsum("nchw,ck->nkhw", x_nchw, w_ck) + b_k[None, :, None, None]
    feats = 0.5 * y * (1.0 + lax.erf(y / jnp.sqrt(2.0)))
    if return_feats:
        return feats
    return jnp.max(feats, axis=(2, 3), keepdims=True)


if __name__ == "__main__":
    key = jax.random.PRNGKey(0)

    # Case 1: divisible spatial extent (prev_channels=4, n_classes=8, batch=2, 16x16)
    N, C, H, W, K = 2, 4, 16, 16, 8
    kx, kw, kb = jax.random.split(key, 3)
    x = jax.random.normal(kx, (N, C, H, W), dtype=jnp.float32)
    w_ck = jax.random.normal(kw, (C, K), dtype=jnp.float32) * 0.1
    b_k = jax.random.normal(kb, (K,), dtype=jnp.float32) * 0.1

    feats = jax.block_until_ready(vision_language_head(x, w_ck, b_k, True))
    pooled = jax.block_until_ready(vision_language_head(x, w_ck, b_k, False))
    assert feats.shape == (N, K, H, W)
    assert pooled.shape == (N, K, 1, 1)
    assert jnp.allclose(feats, _reference(x, w_ck, b_k, True), atol=1e-5, rtol=1e-5)
    assert jnp.allclose(pooled, _reference(x, w_ck, b_k, False), atol=1e-5, rtol=1e-5)

    # Case 2: tiny, non-aligned spatial extent (full-extent blocks, no padding)
    H2, W2 = 5, 7
    x2 = jax.random.normal(jax.random.PRNGKey(1), (N, C, H2, W2), dtype=jnp.float32)
    feats2 = jax.block_until_ready(vision_language_head(x2, w_ck, b_k, True))
    pooled2 = jax.block_until_ready(vision_language_head(x2, w_ck, b_k, False))
    assert feats2.shape == (N, K, H2, W2)
    assert pooled2.shape == (N, K, 1, 1)
    assert jnp.allclose(feats2, _reference(x2, w_ck, b_k, True), atol=1e-5, rtol=1e-5)
    assert jnp.allclose(pooled2, _reference(x2, w_ck, b_k, False), atol=1e-5, rtol=1e-5)

    # Case 3: N=1, forced small tile -> multi-tile grid with a partial last block
    # (no wrapper pad/slice), pooled reduction split across 2 parallel parts.
    H3, W3 = 20, 20
    x3 = jax.random.normal(jax.random.PRNGKey(2), (1, C, H3, W3), dtype=jnp.float32)
    feats3 = jax.block_until_ready(vision_language_head(x3, w_ck, b_k, True, t_hw=128))
    pooled3 = jax.block_until_ready(vision_language_head(x3, w_ck, b_k, False, t_hw=128))
    assert feats3.shape == (1, K, H3, W3)
    assert pooled3.shape == (1, K, 1, 1)
    assert jnp.allclose(feats3, _reference(x3, w_ck, b_k, True), atol=1e-5, rtol=1e-5)
    assert jnp.allclose(pooled3, _reference(x3, w_ck, b_k, False), atol=1e-5, rtol=1e-5)

    # Case 4: optional fast paths (tanh-approx GELU + bf16 feats stream), looser tolerance.
    feats4 = jax.block_until_ready(vision_language_head(
        x, w_ck, b_k, True, approximate_gelu=True, feats_dtype=jnp.bfloat16))
    pooled4 = jax.block_until_ready(vision_language_head(
        x, w_ck, b_k, False, approximate_gelu=True))
    assert feats4.dtype == jnp.bfloat16
    assert jnp.allclose(feats4.astype(jnp.float32), _reference(x, w_ck, b_k, True),
                        atol=5e-2, rtol=5e-2)
    assert jnp.allclose(pooled4, _reference(x, w_ck, b_k, False), atol=5e-2, rtol=5e-2)

    print("KERNEL_OK")
</pallas_src>

<mosaic_0001>
module attributes {stable_mosaic.version = 11 : i64} {
  func.func @_conv1x1_gelu_kernel(%arg0: i32, %arg1: i32, %arg2: memref<2x4x256xf32, #tpu.memory_space<vmem>>, %arg3: memref<8x4xf32, #tpu.memory_space<vmem>>, %arg4: memref<8x1xf32, #tpu.memory_space<vmem>>, %arg5: memref<2x8x256xf32, #tpu.memory_space<vmem>>) attributes {dimension_semantics = [#tpu.dimension_semantics<parallel>, #tpu.dimension_semantics<parallel>], iteration_bounds = array<i64: 1, 1>, scalar_prefetch = 0 : i64, scratch_operands = 0 : i64, tpu.core_type = #tpu.core_type<tc>, window_params = [{transform_indices = @transform_0, window_bounds = array<i64: 2, 4, 256>}, {pipeline_mode = #tpu.pipeline_mode<synchronous>, transform_indices = @transform_1, window_bounds = array<i64: 8, 4>}, {pipeline_mode = #tpu.pipeline_mode<synchronous>, transform_indices = @transform_2, window_bounds = array<i64: 8, 1>}, {transform_indices = @transform_3, window_bounds = array<i64: 2, 8, 256>}]} {
    %c0 = arith.constant 0 : index
    %c0_0 = arith.constant 0 : index
    %0 = vector.load %arg3[%c0, %c0_0] : memref<8x4xf32, #tpu.memory_space<vmem>>, vector<8x4xf32>
    %c0_1 = arith.constant 0 : index
    %c0_2 = arith.constant 0 : index
    %c0_3 = arith.constant 0 : index
    %1 = vector.load %arg2[%c0_1, %c0_2, %c0_3] : memref<2x4x256xf32, #tpu.memory_space<vmem>>, vector<1x4x256xf32>
    %2 = vector.shape_cast %1 : vector<1x4x256xf32> to vector<4x256xf32>
    %cst = arith.constant dense<0.000000e+00> : vector<8x256xf32>
    %3 = tpu.matmul %0, %2, %cst {dimension_numbers = #tpu.dot_dimension_numbers<[1], [0], [0], [1], [0, 0, 1, 1], [], []>} : vector<8x4xf32>, vector<4x256xf32>, vector<8x256xf32> -> vector<8x256xf32>
    %c0_4 = arith.constant 0 : index
    %c0_5 = arith.constant 0 : index
    %4 = vector.load %arg4[%c0_4, %c0_5] : memref<8x1xf32, #tpu.memory_space<vmem>>, vector<8x1xf32>
    %5 = vector.broadcast %4 : vector<8x1xf32> to vector<8x256xf32>
    %6 = arith.addf %3, %5 : vector<8x256xf32>
    %cst_6 = arith.constant 5.000000e-01 : f32
    %7 = vector.broadcast %cst_6 : f32 to vector<8x256xf32>
    %8 = arith.mulf %7, %6 : vector<8x256xf32>
    %cst_7 = arith.constant 0.707106769 : f32
    %9 = vector.broadcast %cst_7 : f32 to vector<8x256xf32>
    %10 = arith.mulf %6, %9 : vector<8x256xf32>
    %11 = math.erf %10 : vector<8x256xf32>
    %cst_8 = arith.constant 1.000000e+00 : f32
    %12 = vector.broadcast %cst_8 : f32 to vector<8x256xf32>
    %13 = arith.addf %12, %11 : vector<8x256xf32>
    %14 = arith.mulf %8, %13 : vector<8x256xf32>
    %c0_9 = arith.constant 0 : index
    %c0_10 = arith.constant 0 : index
    %c0_11 = arith.constant 0 : index
    %15 = vector.load %arg5[%c0_9, %c0_10, %c0_11] : memref<2x8x256xf32, #tpu.memory_space<vmem>>, vector<1x8x256xf32>
    %16 = vector.shape_cast %15 : vector<1x8x256xf32> to vector<8x256xf32>
    %17 = vector.shape_cast %14 : vector<8x256xf32> to vector<1x8x256xf32>
    tpu.vector_store %arg5[%c0_9, %c0_10, %c0_11], %17 {strides = array<i32>} : memref<2x8x256xf32, #tpu.memory_space<vmem>>, vector<1x8x256xf32>,
    %c0_12 = arith.constant 0 : index
    %c0_13 = arith.constant 0 : index
    %18 = vector.load %arg3[%c0_12, %c0_13] : memref<8x4xf32, #tpu.memory_space<vmem>>, vector<8x4xf32>
    %c1 = arith.constant 1 : index
    %c0_14 = arith.constant 0 : index
    %c0_15 = arith.constant 0 : index
    %19 = vector.load %arg2[%c1, %c0_14, %c0_15] : memref<2x4x256xf32, #tpu.memory_space<vmem>>, vector<1x4x256xf32>
    %20 = vector.shape_cast %19 : vector<1x4x256xf32> to vector<4x256xf32>
    %cst_16 = arith.constant dense<0.000000e+00> : vector<8x256xf32>
    %21 = tpu.matmul %18, %20, %cst_16 {dimension_numbers = #tpu.dot_dimension_numbers<[1], [0], [0], [1], [0, 0, 1, 1], [], []>} : vector<8x4xf32>, vector<4x256xf32>, vector<8x256xf32> -> vector<8x256xf32>
    %c0_17 = arith.constant 0 : index
    %c0_18 = arith.constant 0 : index
    %22 = vector.load %arg4[%c0_17, %c0_18] : memref<8x1xf32, #tpu.memory_space<vmem>>, vector<8x1xf32>
    %23 = vector.broadcast %22 : vector<8x1xf32> to vector<8x256xf32>
    %24 = arith.addf %21, %23 : vector<8x256xf32>
    %cst_19 = arith.constant 5.000000e-01 : f32
    %25 = vector.broadcast %cst_19 : f32 to vector<8x256xf32>
    %26 = arith.mulf %25, %24 : vector<8x256xf32>
    %cst_20 = arith.constant 0.707106769 : f32
    %27 = vector.broadcast %cst_20 : f32 to vector<8x256xf32>
    %28 = arith.mulf %24, %27 : vector<8x256xf32>
    %29 = math.erf %28 : vector<8x256xf32>
    %cst_21 = arith.constant 1.000000e+00 : f32
    %30 = vector.broadcast %cst_21 : f32 to vector<8x256xf32>
    %31 = arith.addf %30, %29 : vector<8x256xf32>
    %32 = arith.mulf %26, %31 : vector<8x256xf32>
    %c1_22 = arith.constant 1 : index
    %c0_23 = arith.constant 0 : index
    %c0_24 = arith.constant 0 : index
    %33 = vector.load %arg5[%c1_22, %c0_23, %c0_24] : memref<2x8x256xf32, #tpu.memory_space<vmem>>, vector<1x8x256xf32>
    %34 = vector.shape_cast %33 : vector<1x8x256xf32> to vector<8x256xf32>
    %35 = vector.shape_cast %32 : vector<8x256xf32> to vector<1x8x256xf32>
    tpu.vector_store %arg5[%c1_22, %c0_23, %c0_24], %35 {strides = array<i32>} : memref<2x8x256xf32, #tpu.memory_space<vmem>>, vector<1x8x256xf32>,
    return
  }
  func.func @transform_0(%arg0: i32, %arg1: i32) -> (i32, i32, i32) {
    %c0_i32 = arith.constant 0 : i32
    %c0_i32_0 = arith.constant 0 : i32
    return %arg0, %c0_i32, %arg1 : i32, i32, i32
  }
  func.func @transform_1(%arg0: i32, %arg1: i32) -> (i32, i32) {
    %c0_i32 = arith.constant 0 : i32
    %c0_i32_0 = arith.constant 0 : i32
    %c0_i32_1 = arith.constant 0 : i32
    return %c0_i32, %c0_i32_0 : i32, i32
  }
  func.func @transform_2(%arg0: i32, %arg1: i32) -> (i32, i32) {
    %c0_i32 = arith.constant 0 : i32
    %c0_i32_0 = arith.constant 0 : i32
    %c0_i32_1 = arith.constant 0 : i32
    return %c0_i32, %c0_i32_0 : i32, i32
  }
  func.func @transform_3(%arg0: i32, %arg1: i32) -> (i32, i32, i32) {
    %c0_i32 = arith.constant 0 : i32
    %c0_i32_0 = arith.constant 0 : i32
    return %arg0, %c0_i32, %arg1 : i32, i32, i32
  }
}

</mosaic_0001>

<bundles_post_ra>
// kernel: tpu_custom_call.1
= control target key start
LH: loop header
LB: loop body
LE: loop exit
PB: predicated region body
PF: predicated region fallthrough
CT: control target
= control target key end

     0   :  { %vm29_vm0 = vcmask 1043456   ;;  %v282_v4 = vmov 0.0   ;;  %s335_s0 = inlined_call_operand.vmem [shape: f32[2,4,256], index: 0, kind: input, shape index: {}]   ;;  %s336_s1 = inlined_call_operand.vmem [shape: f32[8,4], index: 1, kind: input, shape index: {}]   ;;  %s337_s2 = inlined_call_operand.vmem [shape: f32[8,1], index: 2, kind: input, shape index: {}]   ;;  %s338_s3 = inlined_call_operand.hbm [shape: f32[2,8,256], index: 3, kind: output, shape index: {}]  }
   0x1   :  { %v16_v0 = vld [vmem:[%s335_s0] sm:$0xff]  ;;  %v238_v1 = vld [vmem:[%s335_s0 + $0x8] sm:$0xff]  ;;  %98 = vmatprep.mubr.f32.mxu0 %v282_v4  ;;  %199 = vmatprep.mubr.f32.mxu1 %v282_v4 }
   0x2   :  { %v24_v2 = vcombine.high %v16_v0, %v16_v0  ;;  %v127_v3 = vcombine.high %v238_v1, %v238_v1 }
   0x3   :  { %8 = vsyncpa [#allocation3], 0  ;;  %v15_v5 = vld [vmem:[%s336_s1] sm:$0xff]  ;;  %vm25_vm1 = vcmask 31744   ;;  %v283_v6 = vmov 0   ;;  %s284_s0 = smov [#allocation2]  }
   0x4   :  { %247 = vset.pattern.permute.xlu0 %v283_v6  ;;  %235 = vmatprep.subr.msk.mxu0 %vm29_vm0, %v24_v2  ;;  %v17_v7 = vld [vmem:[%s337_s2] sm:$0xff]  ;;  %s224_s1 = sshll.u32 %s284_s0, 4  ;;  %s225_s1 = int_to_ptr.vmem [resolvable:$true] %s224_s1 }
   0x5   :  { %239 = vmatprep.subr.msk.mxu1 %vm29_vm0, %v127_v3  ;;  %236 = vmatpush1.msk.msra.mxu0 %vm29_vm0, %v16_v0  ;;  %s258_s2 = scalar_lea.vmem %s225_s1, 512  ;;  %p263_p1 = scmp.lt.s32.totalorder %s225_s1, %s225_s1 }
   0x6   :  { %240 = vmatpush1.msk.msra.mxu1 %vm29_vm0, %v238_v1  ;;  %237 = vmatmul.mubr.msk.f32.vlgmr.msra.gmra.mrb[0].mxu0 %vm25_vm1, %v15_v5  ;;  %p259_p0 = scmp.ne.s32.totalorder %s225_s1, %s258_s2  ;;  %p264_p2 = scmp.lt.s32.totalorder %s258_s2, %s258_s2 }
   0x7   :  { %241 = vmatmul.mubr.msk.f32.vlgmr.msra.gmra.mrb[0].mxu1 %vm25_vm1, %v15_v5  ;;  %20 = vperm.xlu0 %247, %v17_v7  }
   0x8   :  { %p265_p3 = por %p264_p2, %p263_p1 }
   0xa   :  { %p266_p4 = pnand %p265_p3, %p259_p0 }
   0xb   :  { %123 = vperm.xlu0 %247, %v17_v7  }
  0x86   :  { %v21_v8 = vpop.permute.xlu0 %20 }
  0x8a   :  { %v124_v9 = vpop.permute.xlu0 %123 }
  0xd9   :  { %v100_v10 = vpop.f32.mrb[0].mxu0 }
  0xda   :  { %v201_v11 = vpop.f32.mrb[0].mxu1  ;;  %v101_v12 = vadd.f32 %v100_v10, %v21_v8  ;;  %v102_v14 = vpop.f32.mrb[1].mxu0 }
  0xdb   :  { %v202_v13 = vadd.f32 %v201_v11, %v124_v9  ;;  %v203_v15 = vpop.f32.mrb[1].mxu1  ;;  %v103_v16 = vadd.f32 %v102_v14, %v21_v8 }
  0xdc   :  { %v204_v17 = vadd.f32 %v203_v15, %v124_v9  ;;  %v107_v18 = vmul.f32 0.70710677, %v101_v12  ;;  %v105_v24 = vmul.f32 0.5, %v101_v12 }
  0xdd   :  { %v208_v19 = vmul.f32 0.70710677, %v202_v13  ;;  %v108_v20 = vmul.f32 0.70710677, %v103_v16  ;;  %v206_v27 = vmul.f32 0.5, %v202_v13  ;;  %v106_v31 = vmul.f32 0.5, %v103_v16 }
  0xde   :  { %v209_v21 = vmul.f32 0.70710677, %v204_v17  ;;  %250 = verf.f32 %v107_v18  ;;  %v207_v34 = vmul.f32 0.5, %v204_v17 }
  0xdf   :  { %252 = verf.f32 %v208_v19 }
  0xe0   :  { %254 = verf.f32 %v108_v20 }
  0xe1   :  { %256 = verf.f32 %v209_v21 }
  0xe8   :  { %v251_v22 = vpop.eup %250 }
  0xe9   :  { %v253_v23 = vpop.eup %252  ;;  %v111_v25 = vadd.f32 1.0, %v251_v22 }
  0xea   :  { %v255_v26 = vpop.eup %254  ;;  %v212_v28 = vadd.f32 1.0, %v253_v23 }
  0xeb   :  { %v257_v29 = vpop.eup %256  ;;  %v113_v30 = vmul.f32 %v111_v25, %v105_v24  ;;  %v112_v32 = vadd.f32 1.0, %v255_v26 }
  0xec   :  { %v214_v33 = vmul.f32 %v212_v28, %v206_v27  ;;  %v213_v35 = vadd.f32 1.0, %v257_v29 }
  0xed   :  { %115 = vst [vmem:[#allocation2] sm:$0xff] %v113_v30  ;;  %v114_v36 = vmul.f32 %v112_v32, %v106_v31 }
  0xee   :  { %217 = vst [vmem:[#allocation2 + $0x10] sm:$0xff] %v214_v33  ;;  %v215_v37 = vmul.f32 %v213_v35, %v207_v34 }
  0xef   :  { %116 = vst [vmem:[#allocation2 + $0x8] sm:$0xff] %v114_v36 }
  0xf0   :  { %218 = vst [vmem:[#allocation2 + $0x18] sm:$0xff] %v215_v37 }
  0xf1   :  { %269 = shalt.err (!%p266_p4)
}
  0xf2   :  { %s270_s22 = scalar_lea.hbm %s338_s3, 512 }
  0xf3   :  { %p271_p5 = scmp.ne.s32.totalorder %s338_s3, %s270_s22  ;;  %p274_p6 = scmp.lt.u32.totalorder %s270_s22, %s338_s3 }
  0xf5   :  { %p276_p7 = pnand %p274_p6, %p271_p5 }
  0xf7   :  { %279 = shalt.err (!%p276_p7)
}
  0xf8   :  { %s285_s27 = smov 256   ;;  %s286_s28 = smov 16  }
  0xf9   :  { %230 = dma.vmem_to_hbm [thread:$0]  %s225_s1, 512, %s338_s3, [#allocation3], %s285_s27, %s285_s27, %s286_s28  }
  0xfa   :  { %280 = dma.done.wait [#allocation3], 512  }
  0xfb   :  { %281 = vsyncadd [#allocation3], 4294966784 }
  0xfc   :  { %234 = vsyncpa [#allocation3], 1 }

</bundles_post_ra>
